<compile_context>
chip_gen: v7x
topology: tpu7x:2x2x1
jax: 0.10.0
libtpu: 0.0.40
codegen_flags: <defaults>
</compile_context>

<pallas_src>
import functools

import jax
import jax.numpy as jnp
from jax.experimental import pallas as pl
from jax.experimental.pallas import tpu as pltpu


# ---------------------------------------------------------------------------
# Fused kernel: pass-through copy + std-channel write, scalar SMEM accumulator
# ---------------------------------------------------------------------------
def _fused_kernel(x_ref, o_ref, acc_ref, *, n_in, inv_n, inv_nm1, inv_feat):
    """Grid step i:
         i <  n_in : copy the image tile through and accumulate sum of
                     per-feature (per-column) std over the batch.
         i >= n_in : broadcast the finished scalar stat into the std channel.
    """
    i = pl.program_id(0)

    @pl.when(i == 0)
    def _():
        acc_ref[0] = jnp.float32(0.0)

    @pl.when(i < n_in)
    def _():
        x_raw = x_ref[...]                    # (N, T) in input dtype
        o_ref[...] = x_raw                    # fused concat: pass-through copy
        x = x_raw.astype(jnp.float32)
        mean = jnp.sum(x, axis=0, keepdims=True) * inv_n
        diff = x - mean                       # tile-sized temporary only
        var = jnp.sum(diff * diff, axis=0, keepdims=True) * inv_nm1
        acc_ref[0] += jnp.sum(jnp.sqrt(var))  # running sum of per-feature std

    @pl.when(i >= n_in)
    def _():
        stat = acc_ref[0] * inv_feat + 1e-6
        o_ref[...] = jnp.full(o_ref.shape, stat, dtype=o_ref.dtype)


def _pick_tile_cols(feat_per_channel, n, itemsize, budget_bytes=1 << 20):
    """Largest T = 128*d with d | (feat_per_channel//128) and N*T*itemsize <= budget."""
    rows = feat_per_channel // 128
    max_rows = max(1, budget_bytes // (n * 128 * itemsize))
    best = 1
    for d in range(1, rows + 1):
        if rows % d == 0 and d <= max_rows:
            best = d
    return 128 * best


# ---------------------------------------------------------------------------
# Fallback (H*W not a multiple of 128): compute only the scalar stat in-kernel,
# build the std channel + concat in plain JAX (still avoids writing a broadcast
# map from the kernel).
# ---------------------------------------------------------------------------
def _stat_kernel(x_ref, stat_ref):
    x = x_ref[...].astype(jnp.float32)
    n = x.shape[0]
    inv_nm1 = (1.0 / (n - 1)) if n > 1 else float("nan")
    mean = jnp.sum(x, axis=0, keepdims=True) * (1.0 / n)
    diff = x - mean
    var = jnp.sum(diff * diff, axis=0, keepdims=True) * inv_nm1
    stat_ref[0, 0] = jnp.mean(jnp.sqrt(var)) + 1e-6


def _minibatch_std_fallback(img):
    N, C, H, W = img.shape
    x2d = img.reshape(N, C * H * W)
    stat = pl.pallas_call(
        _stat_kernel,
        out_shape=jax.ShapeDtypeStruct((1, 1), jnp.float32),
        out_specs=pl.BlockSpec(memory_space=pltpu.MemorySpace.SMEM),
    )(x2d)
    std_map = jnp.full((N, 1, H, W), stat[0, 0], dtype=img.dtype)
    return jnp.concatenate([img, std_map], axis=1)


# ---------------------------------------------------------------------------
# Public wrapper
# ---------------------------------------------------------------------------
def minibatch_std(img):
    """img: (N, C, H, W) -> (N, C+1, H, W), matching MiniBatchSTD.forward."""
    N, C, H, W = img.shape
    F = H * W
    itemsize = jnp.dtype(img.dtype).itemsize

    if F % 128 != 0:
        return _minibatch_std_fallback(img)

    T = _pick_tile_cols(F, N, itemsize)          # lane-dense tile, T | F, T % 128 == 0
    n_in = (C * F) // T                          # image-copy steps
    n_steps = ((C + 1) * F) // T                 # + std-channel steps

    # Note: unbiased std divides by (N-1); N == 1 yields NaN, same as torch.std.
    inv_nm1 = (1.0 / (N - 1)) if N > 1 else float("nan")

    kernel = functools.partial(
        _fused_kernel,
        n_in=n_in,
        inv_n=1.0 / N,
        inv_nm1=inv_nm1,
        inv_feat=1.0 / (C * F),
    )

    x2d = img.reshape(N, C * F)                  # metadata-only reshape
    out2d = pl.pallas_call(
        kernel,
        out_shape=jax.ShapeDtypeStruct((N, (C + 1) * F), img.dtype),
        grid_spec=pltpu.PrefetchScalarGridSpec(
            num_scalar_prefetch=0,
            grid=(n_steps,),
            in_specs=[
                # std-channel steps re-read the last image tile (unused, tiny).
                pl.BlockSpec((N, T), lambda i: (0, jnp.minimum(i, n_in - 1))),
            ],
            out_specs=pl.BlockSpec((N, T), lambda i: (0, i)),
            scratch_shapes=[pltpu.SMEM((1,), jnp.float32)],
        ),
        compiler_params=pltpu.CompilerParams(
            dimension_semantics=("arbitrary",),   # scalar carry across steps
            vmem_limit_bytes=32 * 1024 * 1024,
        ),
        cost_estimate=pl.CostEstimate(
            flops=5 * N * C * F,
            transcendentals=C * F,
            bytes_accessed=N * C * F * itemsize + N * (C + 1) * F * itemsize,
        ),
    )(x2d)
    return out2d.reshape(N, C + 1, H, W)         # metadata-only reshape


# ---------------------------------------------------------------------------
# Pure-JAX reference
# ---------------------------------------------------------------------------
def _reference(img):
    N, _, H, W = img.shape
    stat = jnp.mean(jnp.std(img, axis=0, ddof=1)) + 1e-6
    std_map = jnp.full((N, 1, H, W), stat, dtype=img.dtype)
    return jnp.concatenate([img, std_map], axis=1)


if __name__ == "__main__":
    key = jax.random.PRNGKey(0)
    N, C, H, W = 2, 4, 16, 16
    img = jax.random.normal(key, (N, C, H, W), dtype=jnp.float32)

    out = minibatch_std(img)
    out = jax.block_until_ready(out)

    ref = _reference(img)
    assert out.shape == (N, C + 1, H, W), out.shape
    assert jnp.allclose(out, ref, atol=1e-5, rtol=1e-5), "mismatch vs reference"

    print("KERNEL_OK")
</pallas_src>

<mosaic_0001>
module attributes {stable_mosaic.version = 11 : i64} {
  func.func @_fused_kernel(%arg0: i32, %arg1: memref<2x256xf32, #tpu.memory_space<vmem>>, %arg2: memref<2x256xf32, #tpu.memory_space<vmem>>, %arg3: memref<1xf32, #tpu.memory_space<smem>>) attributes {dimension_semantics = [#tpu.dimension_semantics<arbitrary>], iteration_bounds = array<i64: 5>, scalar_prefetch = 0 : i64, scratch_operands = 1 : i64, tpu.core_type = #tpu.core_type<tc>, window_params = [{transform_indices = @transform_0, window_bounds = array<i64: 2, 256>}, {transform_indices = @transform_1, window_bounds = array<i64: 2, 256>}]} {
    %c0_i32 = arith.constant 0 : i32
    %0 = arith.cmpi eq, %arg0, %c0_i32 : i32
    %1 = arith.extui %0 : i1 to i32
    %c0_i32_0 = arith.constant 0 : i32
    %2 = arith.cmpi ne, %1, %c0_i32_0 : i32
    scf.if %2 {
      %cst = arith.constant 0.000000e+00 : f32
      %c0 = arith.constant 0 : index
      %9 = memref.load %arg3[%c0] : memref<1xf32, #tpu.memory_space<smem>>
      memref.store %cst, %arg3[%c0] : memref<1xf32, #tpu.memory_space<smem>>
    } else {
    }
    %c4_i32 = arith.constant 4 : i32
    %3 = arith.cmpi slt, %arg0, %c4_i32 : i32
    %4 = arith.extui %3 : i1 to i32
    %c0_i32_1 = arith.constant 0 : i32
    %5 = arith.cmpi ne, %4, %c0_i32_1 : i32
    scf.if %5 {
      %c0 = arith.constant 0 : index
      %c0_4 = arith.constant 0 : index
      %9 = vector.load %arg1[%c0, %c0_4] : memref<2x256xf32, #tpu.memory_space<vmem>>, vector<2x256xf32>
      %c0_5 = arith.constant 0 : index
      %c0_6 = arith.constant 0 : index
      %10 = vector.load %arg2[%c0_5, %c0_6] : memref<2x256xf32, #tpu.memory_space<vmem>>, vector<2x256xf32>
      tpu.vector_store %arg2[%c0_5, %c0_6], %9 {strides = array<i32>} : memref<2x256xf32, #tpu.memory_space<vmem>>, vector<2x256xf32>,
      %cst = arith.constant dense<0.000000e+00> : vector<256xf32>
      %11 = vector.multi_reduction <add>, %9, %cst [0] : vector<2x256xf32> to vector<256xf32>
      %12 = vector.shape_cast %11 : vector<256xf32> to vector<1x256xf32>
      %cst_7 = arith.constant 5.000000e-01 : f32
      %13 = vector.broadcast %cst_7 : f32 to vector<1x256xf32>
      %14 = arith.mulf %12, %13 : vector<1x256xf32>
      %15 = vector.broadcast %14 : vector<1x256xf32> to vector<2x256xf32>
      %16 = arith.subf %9, %15 : vector<2x256xf32>
      %17 = arith.mulf %16, %16 : vector<2x256xf32>
      %cst_8 = arith.constant dense<0.000000e+00> : vector<256xf32>
      %18 = vector.multi_reduction <add>, %17, %cst_8 [0] : vector<2x256xf32> to vector<256xf32>
      %19 = vector.shape_cast %18 : vector<256xf32> to vector<1x256xf32>
      %cst_9 = arith.constant 1.000000e+00 : f32
      %20 = vector.broadcast %cst_9 : f32 to vector<1x256xf32>
      %21 = arith.mulf %19, %20 : vector<1x256xf32>
      %c0_10 = arith.constant 0 : index
      %22 = memref.load %arg3[%c0_10] : memref<1xf32, #tpu.memory_space<smem>>
      %23 = math.sqrt %21 : vector<1x256xf32>
      %24 = vector.shape_cast %23 : vector<1x256xf32> to vector<1x1x256xf32>
      %cst_11 = arith.constant dense<0.000000e+00> : vector<1xf32>
      %25 = vector.multi_reduction <add>, %24, %cst_11 [1, 2] : vector<1x1x256xf32> to vector<1xf32>
      %26 = vector.shape_cast %25 : vector<1xf32> to vector<1x1x1xf32>
      %27 = vector.extract %26[0, 0, 0] : f32 from vector<1x1x1xf32>
      %28 = arith.addf %22, %27 : f32
      %c0_12 = arith.constant 0 : index
      %29 = memref.load %arg3[%c0_12] : memref<1xf32, #tpu.memory_space<smem>>
      memref.store %28, %arg3[%c0_12] : memref<1xf32, #tpu.memory_space<smem>>
    } else {
    }
    %c4_i32_2 = arith.constant 4 : i32
    %6 = arith.cmpi sge, %arg0, %c4_i32_2 : i32
    %7 = arith.extui %6 : i1 to i32
    %c0_i32_3 = arith.constant 0 : i32
    %8 = arith.cmpi ne, %7, %c0_i32_3 : i32
    scf.if %8 {
      %c0 = arith.constant 0 : index
      %9 = memref.load %arg3[%c0] : memref<1xf32, #tpu.memory_space<smem>>
      %cst = arith.constant 9.765625E-4 : f32
      %10 = arith.mulf %9, %cst : f32
      %cst_4 = arith.constant 9.99999997E-7 : f32
      %11 = arith.addf %10, %cst_4 : f32
      %12 = vector.broadcast %11 : f32 to vector<2x256xf32>
      %c0_5 = arith.constant 0 : index
      %c0_6 = arith.constant 0 : index
      %13 = vector.load %arg2[%c0_5, %c0_6] : memref<2x256xf32, #tpu.memory_space<vmem>>, vector<2x256xf32>
      tpu.vector_store %arg2[%c0_5, %c0_6], %12 {strides = array<i32>} : memref<2x256xf32, #tpu.memory_space<vmem>>, vector<2x256xf32>,
    } else {
    }
    return
  }
  func.func @transform_0(%arg0: i32) -> (i32, i32) {
    %c3_i32 = arith.constant 3 : i32
    %0 = arith.minsi %arg0, %c3_i32 : i32
    %c0_i32 = arith.constant 0 : i32
    %c0_i32_0 = arith.constant 0 : i32
    return %c0_i32, %0 : i32, i32
  }
  func.func @transform_1(%arg0: i32) -> (i32, i32) {
    %c0_i32 = arith.constant 0 : i32
    %c0_i32_0 = arith.constant 0 : i32
    return %c0_i32, %arg0 : i32, i32
  }
}

</mosaic_0001>

<bundles_post_ra>
// kernel: tpu_custom_call.1
= control target key start
LH: loop header
LB: loop body
LE: loop exit
PB: predicated region body
PF: predicated region fallthrough
CT: control target
= control target key end

     0   :  { %6 = vsyncpa [#allocation4], 0  ;;  %s782_s0 = inlined_call_operand.hbm [shape: f32[2,1024], index: 0, kind: input, shape index: {}]   ;;  %s783_s1 = inlined_call_operand.hbm [shape: f32[2,1280], index: 1, kind: output, shape index: {}]  }
   0x1   :  { %8 = vsyncpa [#allocation4 + $0x1], 0 }
   0x2   :  { %9 = vsyncpa [#allocation5], 0 }
   0x3   :  { %11 = vsyncpa [#allocation5 + $0x1], 0  ;;  %s582_s6 = smov 0   ;;  %s584_s7 = smov 0  }
   0x4   :  { %s586_s8 = smov 0   ;;  %s588_s9 = smov 0  }
   0x5   :  { %s590_s10 = smov 0   ;;  %s592_s11 = smov 0  }
   0x6   :  { %s594_s12 = smov 0  }
   0x7 LB: > { %s616_s13 = sadd.s32 4294967295, %s566_s12   ;;  %s346_s14 = sadd.s32 4294967294, %s566_s12   ;;  %s566_s12 = sphi %s594_s12, %s802_s12   ;;  %s562_s11 = sphi %s592_s11, %s801_s11   ;;  %s558_s10 = sphi %s590_s10, %s800_s10   ;;  %s554_s9 = sphi %s588_s9, %s799_s9   ;;  %s550_s8 = sphi %s586_s8, %s798_s8   ;;  %s546_s7 = sphi %s584_s7, %s797_s7   ;;  %s542_s6 = sphi %s582_s6, %s796_s6  }
   0x8   : > { %s620_s15 = sadd.s32 1, %s566_s12   ;;  %p21_p0 = scmp.lt.s32.totalorder %s566_s12, 3 }
   0x9   : > { %p23_p1 = scmp.lt.s32.totalorder %s620_s15, 3  ;;  %s28_s16 = sadd.s32 1, %s562_s11 }
   0xa   : > { %s22_s17 = scalar_select %p21_p0, %s566_s12, 3 }
   0xb   : > { %s24_s18 = scalar_select %p23_p1, %s620_s15, 3 }
   0xc   : > { %p35_p2 = scmp.ne.s32.totalorder %s562_s11, %s558_s10  ;;  %p36_p3 = scmp.eq.s32.totalorder %s566_s12, 0 }
   0xd   : > { %s25_s19 = ssub.s32 %s22_s17, %s24_s18  ;;  %p41_p4 = scmp.ne.s32.totalorder %s558_s10, %s554_s9 }
   0xe   : > { %p26_p5 = scmp.eq.s32.totalorder %s25_s19, 0  ;;  %p631_p6 = por %p36_p3, %p35_p2 }
   0xf   : > { %p784_p7 = scmp.eq.s32.totalorder %s616_s13, 0  ;;  %s51_s21 = ssub.s32 %s566_s12, %s620_s15 }
  0x10   : > { %s639_s22 = scalar_select %p26_p5, %s562_s11, %s28_s16  }
  0x11   : > { %p643_p8 = por %p784_p7, %p41_p4  ;;  %p52_p9 = scmp.eq.s32.totalorder %s51_s21, 0 }
  0x12   : > { %s54_s24 = sadd.s32 1, %s550_s8  ;;  %p64_p10 = scmp.ne.s32.totalorder %s550_s8, %s546_s7 }
  0x13   : > { %s651_s25 = scalar_select %p52_p9, %s550_s8, %s54_s24  }
  0x14   : > { %p65_p11 = scmp.eq.s32.totalorder %s616_s13, 4  ;;  %p70_p12 = scmp.ne.s32.totalorder %s546_s7, %s542_s6 }
  0x15   : > { %p71_p13 = scmp.eq.s32.totalorder %s346_s14, 4  ;;  %p381_p1 = scmp.lt.s32.totalorder %s566_s12, 5 }
  0x16   : > { %p656_p0 = por %p65_p11, %p64_p10  ;;  %s91_s28 = sand.u32 1, %s562_s11  }
  0x17   : > { %p661_p2 = por %p71_p13, %p70_p12  ;;  %s349_s29 = sshll.u32 %s91_s28, 2 }
  0x18   : > { %s788_s26 = scalar_select %p656_p0, 1, 0 }
  0x19   : > { %s789_s27 = scalar_select %p661_p2, 1, 0 }
  0x1a   : > { %s363_s30 = sshll.u32 %s22_s17, 6  ;;  %s95_s5 = scalar_lea.vmem [#allocation3], %s349_s29 }
  0x1b   : > { %s669_s4 = scalar_lea.hbm %s782_s0, %s363_s30  ;;  %s105_s9 = sshll.u32 %s95_s5, 4  ;;  %s671_s9 = int_to_ptr.vmem [resolvable:$true] %s105_s9 }
  0x1c   : > { %p675_p3 = pnand %p381_p1, %p631_p6  ;;  %s92_s16 = scalar_lea.sflag [#allocation4], %s91_s28 }
  0x1d   : > { %s446_s17 = scalar_lea.hbm %s669_s4, 64  ;;  %s451_s20 = scalar_lea.hbm %s782_s0, 256 }
  0x1e   : > { %p447_p9 = scmp.ne.s32.totalorder %s669_s4, %s446_s17  ;;  %p448_p10 = pneg %p675_p3 }
  0x1f   : > { %p452_p6 = scmp.lt.u32.totalorder %s669_s4, %s782_s0  ;;  %p453_p13 = scmp.lt.u32.totalorder %s451_s20, %s446_s17 }
  0x20   : > { %p449_p11 = pnand %p448_p10, %p447_p9  ;;  %p455_p7 = scmp.lt.u32.totalorder %s446_s17, %s669_s4 }
  0x21   : > { %p454_p1 = por %p453_p13, %p452_p6 }
  0x22   : > { %p450_p12 = pneg %p449_p11 }
  0x23   : > { %p456_p4 = por %p455_p7, %p454_p1 }
  0x25   : > { %p457_p5 = pnand %p456_p4, %p450_p12 }
  0x27   : > { %460 = shalt.err (!%p457_p5)
}
  0x28   : > { %s461_s28 = scalar_lea.vmem %s671_s9, 64  ;;  %s568_s29 = smov [#allocation3]  }
  0x29   : > { %p462_p9 = scmp.ne.s32.totalorder %s671_s9, %s461_s28  ;;  %s466_s30 = sshll.u32 %s568_s29, 4  ;;  %s467_s30 = int_to_ptr.vmem [resolvable:$false] %s466_s30 }
  0x2a   : > { %s468_s2 = scalar_lea.vmem %s467_s30, 128  ;;  %p469_p0 = scmp.lt.s32.totalorder %s671_s9, %s467_s30 }
  0x2b   : > { %p464_p11 = pnand %p462_p9, %p448_p10  ;;  %p470_p6 = scmp.lt.s32.totalorder %s468_s2, %s461_s28 }
  0x2d   : > { %p465_p2 = pneg %p464_p11  ;;  %p471_p13 = por %p470_p6, %p469_p0 }
  0x2f   : > { %p472_p7 = pnand %p471_p13, %p465_p2 }
  0x31   : > { %475 = shalt.err (!%p472_p7)
}
  0x32   : > { %376 = dma.hbm_to_vmem [thread:$0]  (!%p675_p3), %s669_s4, 64, %s671_s9, %s92_s16  }
  0x33   : > { %p791_p4 = scmp.lt.s32.totalorder %s566_s12, 6  ;;  %p792_p5 = scmp.ge.s32.totalorder %s566_s12, 1 }
  0x35   : > { %p111_p10 = pnand %p792_p5, %p791_p4 }
  0x36   : > { %s116_s3 = sand.u32 (!%p111_p10), 1, %s558_s10  }
  0x37   : > { %114 = sbr.rel (%p111_p10) target bundleno = 380 (0x17c), region = 24  ;;  %s353_s5 = sshll.u32 (!%p111_p10), %s116_s3, 2 }
  0x38   : > { %s117_s17 = scalar_lea.sflag (!%p111_p10), [#allocation4], %s116_s3  ;;  %s120_s18 = scalar_lea.vmem (!%p111_p10), [#allocation3], %s353_s5 }
  0x3e   : > { %533 = dma.done.wait (%p643_p8), %s117_s17, 64  }
  0x3f   : > { %535 = vsyncadd (%p643_p8), %s117_s17, 4294967232  ;;  %s136_s14 = sand.u32 1, %s546_s7   ;;  %s569_s4 = smov 0.0  }
  0x40   : > { %p793_p0 = scmp.eq.s32.totalorder %s616_s13, 0  ;;  %s354_s9 = sshll.u32 %s136_s14, 2 }
  0x41   : > { %s720_s16 = scalar_lea.vmem [#allocation6], %s354_s9  ;;  %p356_p2 = scmp.ge.s32.totalorder %s616_s13, 4 }
  0x42   : > { %370 = sst [smem:[#allocation2]] (%p793_p0), %s569_s4  ;;  %v153_v0 = vld [vmem:[%s120_s18] sm:$0xf] (!%p356_p2)  ;;  %v159_v1 = vlaneseq (!%p356_p2)  ;;  %v570_v2 = vmov (!%p356_p2), 1983009808   ;;  %vm166_vm0 = vcmask (!%p356_p2), 1041408  }
  0x43   : > { %152 = sbr.rel (%p356_p2) target bundleno = 342 (0x156), region = 36  ;;  %154 = vst [vmem:[%s720_s16] sm:$0xf] (!%p356_p2), %v153_v0  ;;  %v157_v3 = vunpack.c.l.s4 (!%p356_p2), %v570_v2  ;;  %vm236_vm4 = vcmask (!%p356_p2), 1040384   ;;  %s221_s23 = sld [smem:[#allocation2]] (!%p356_p2) }
  0x44   : > { %v160_v4 = vshrl.u32 (!%p356_p2), %v159_v1, 7 }
  0x45   : > { %v158_v5 = vunpack.c.0.s8 (!%p356_p2), %v157_v3 }
  0x47   : > { %v161_v6 = vsub.s32 (!%p356_p2), %v158_v5, %v160_v4 }
  0x49   : > { %v162_v7 = vrot.slane (!%p356_p2), %v153_v0, %v161_v6 }
  0x4b   : > { %v163_v8 = vcombine.high %v162_v7, %v162_v7  ;;  %v167_v9 = vsel %vm166_vm0, %v162_v7, 0.0 }
  0x4c   : > { %v168_v10 = vrot.slane %v167_v9, 4 }
  0x4d   : > { %v174_v11 = vsel %vm166_vm0, %v163_v8, 0.0 }
  0x4e   : > { %v169_v12 = vadd.f32 %v168_v10, %v167_v9  ;;  %v175_v13 = vrot.slane %v174_v11, 4 }
  0x50   : > { %v170_v14 = vrot.slane %v169_v12, 2  ;;  %v176_v15 = vadd.f32 %v175_v13, %v174_v11 }
  0x52   : > { %v171_v16 = vadd.f32 %v170_v14, %v169_v12  ;;  %v177_v17 = vrot.slane %v176_v15, 2 }
  0x54   : > { %v172_v18 = vrot.slane %v171_v16, 1  ;;  %v178_v19 = vadd.f32 %v177_v17, %v176_v15 }
  0x56   : > { %v173_v20 = vadd.f32 %v172_v18, %v171_v16  ;;  %v179_v21 = vrot.slane %v178_v19, 1 }
  0x58   : > { %v180_v22 = vadd.f32 %v179_v21, %v178_v19  ;;  %v181_v23 = vmul.f32 0.5, %v173_v20 }
  0x5a   : > { %v182_v24 = vmul.f32 0.5, %v180_v22 }
  0x5c   : > { %v185_v25 = vcombine.low %v181_v23, %v182_v24 }
  0x5e   : > { %v192_v26 = vrot.slane %v185_v25, %v161_v6 }
  0x60   : > { %v194_v27 = vsub.f32 %v153_v0, %v192_v26 }
  0x62   : > { %v195_v28 = vmul.f32 %v194_v27, %v194_v27 }
  0x64   : > { %v203_v29 = vrot.slane %v195_v28, %v161_v6 }
  0x66   : > { %v204_v30 = vcombine.high %v203_v29, %v203_v29  ;;  %v207_v31 = vsel %vm166_vm0, %v203_v29, 0.0 }
  0x67   : > { %v208_v32 = vrot.slane %v207_v31, 4 }
  0x68   : > { %v214_v33 = vsel %vm166_vm0, %v204_v30, 0.0 }
  0x69   : > { %v209_v34 = vadd.f32 %v208_v32, %v207_v31  ;;  %v215_v35 = vrot.slane %v214_v33, 4 }
  0x6b   : > { %v210_v36 = vrot.slane %v209_v34, 2  ;;  %v216_v37 = vadd.f32 %v215_v35, %v214_v33 }
  0x6d   : > { %v211_v38 = vadd.f32 %v210_v36, %v209_v34  ;;  %v217_v39 = vrot.slane %v216_v37, 2 }
  0x6f   : > { %v212_v40 = vrot.slane %v211_v38, 1  ;;  %v218_v41 = vadd.f32 %v217_v39, %v216_v37 }
  0x71   : > { %v213_v42 = vadd.f32 %v212_v40, %v211_v38  ;;  %v219_v43 = vrot.slane %v218_v41, 1 }
  0x73   : > { %v220_v44 = vadd.f32 %v219_v43, %v218_v41  ;;  %442 = vrsqrt.f32 %v213_v42  ;;  %vm224_vm1 = vcmp.eq.f32.partialorder %v213_v42, inf  ;;  %v227_v46 = vand.u32 2147483648, %v213_v42 }
  0x74   : > { %vm226_vm2 = vcmp.eq.f32.partialorder %v213_v42, 0.0 }
  0x75   : > { %444 = vrsqrt.f32 %v220_v44  ;;  %vm231_vm3 = vcmp.eq.f32.partialorder %v220_v44, inf  ;;  %v234_v49 = vand.u32 2147483648, %v220_v44  ;;  %vm233_vm5 = vcmp.eq.f32.partialorder %v220_v44, 0.0 }
  0x7d   : > { %v443_v45 = vpop.eup %442 }
  0x7e   : > { %v223_v47 = vmul.f32 %v443_v45, %v213_v42 }
  0x7f   : > { %v445_v48 = vpop.eup %444 }
  0x80   : > { %v225_v50 = vsel %vm224_vm1, %v213_v42, %v223_v47  ;;  %v230_v51 = vmul.f32 %v445_v48, %v220_v44 }
  0x81   : > { %v228_v52 = vsel %vm226_vm2, %v227_v46, %v225_v50 }
  0x82   : > { %v232_v53 = vsel %vm231_vm3, %v220_v44, %v230_v51  ;;  %v237_v54 = vsel %vm236_vm4, %v228_v52, 0.0 }
  0x83   : > { %v235_v55 = vsel %vm233_vm5, %v234_v49, %v232_v53 }
  0x84   : > { %v238_v56 = vsel %vm236_vm4, %v235_v55, 0.0 }
  0x85   : > { %v239_v57 = vadd.f32 %v238_v56, %v237_v54 }
  0x87   : > { %240 = vadd.xlane.f32.xlu0 %v239_v57 }
 0x114   : > { %v241_v58 = vpop.xlane.xlu0 %240 }
 0x115   : > { %v242_v59 = vrot.slane %v241_v58, 4 }
 0x117   : > { %v243_v60 = vadd.f32 %v242_v59, %v241_v58 }
 0x119   : > { %v244_v61 = vrot.slane %v243_v60, 2 }
 0x11b   : > { %v245_v62 = vadd.f32 %v244_v61, %v243_v60 }
 0x11d   : > { %v246_v63 = vrot.slane %v245_v62, 1 }
 0x11f   : > { %v247_v0 = vadd.f32 %v246_v63, %v245_v62 }
 0x121   : > { %365 = vpush %v247_v0 }
 0x152   : > { %s366_s19 = spop %365 }
 0x153   : > { %s249_s20 = sadd.f32 %s366_s19, %s221_s23 }
 0x155   : > { %251 = sst [smem:[#allocation2]] %s249_s20 }
 0x156 PF: > { %p357_p8 = scmp.lt.s32.totalorder %s616_s13, 4 }
 0x157   : > { %s256_s21 = sld [smem:[#allocation2]] (!%p357_p8) }
 0x158   : > { %255 = sbr.rel (%p357_p8) target bundleno = 355 (0x163), region = 40 }
 0x15d   : > { %s257_s24 = smul.f32 (!%p357_p8), 0.0009765625, %s256_s21 }
 0x15f   : > { %s258_s28 = sadd.f32 1e-06, %s257_s24 }
 0x161   : > { %v259_v1 = vstv %s258_s28 }
 0x162   : > { %260 = vst [vmem:[%s720_s16] sm:$0xf] %v259_v1 }
 0x163 PF: > { %s364_s29 = sshll.u32 %s616_s13, 6  ;;  %s276_s5 = sshll.u32 %s720_s16, 4  ;;  %s277_s5 = int_to_ptr.vmem [resolvable:$true] %s276_s5 }
 0x164   : > { %s734_s3 = scalar_lea.hbm %s783_s1, %s364_s29  ;;  %s262_s17 = scalar_lea.sflag [#allocation5], %s136_s14 }
 0x165   : > { %s476_s18 = scalar_lea.vmem %s277_s5, 64  ;;  %p794_p12 = scmp.ne.s32.totalorder %s788_s26, 0 }
 0x166   : > { %p477_p3 = scmp.ne.s32.totalorder %s277_s5, %s476_s18  ;;  %s571_s4 = smov [#allocation6]  }
 0x167   : > { %s480_s9 = sshll.u32 %s571_s4, 4  ;;  %s481_s9 = int_to_ptr.vmem [resolvable:$false] %s480_s9 }
 0x168   : > { %p478_p1 = pnand %p477_p3, %p794_p12  ;;  %s482_s23 = scalar_lea.vmem %s481_s9, 128 }
 0x169   : > { %p483_p11 = scmp.lt.s32.totalorder %s277_s5, %s481_s9  ;;  %p484_p6 = scmp.lt.s32.totalorder %s482_s23, %s476_s18 }
 0x16a   : > { %p479_p9 = pneg %p478_p1 }
 0x16b   : > { %p485_p13 = por %p484_p6, %p483_p11 }
 0x16d   : > { %p486_p7 = pnand %p485_p13, %p479_p9 }
 0x16f   : > { %489 = shalt.err (!%p486_p7)
}
 0x170   : > { %s490_s13 = scalar_lea.hbm %s734_s3, 64  ;;  %s494_s19 = scalar_lea.hbm %s783_s1, 320 }
 0x171   : > { %p491_p4 = scmp.ne.s32.totalorder %s734_s3, %s490_s13  ;;  %p495_p0 = scmp.lt.u32.totalorder %s734_s3, %s783_s1 }
 0x172   : > { %p496_p2 = scmp.lt.u32.totalorder %s494_s19, %s490_s13  ;;  %p498_p3 = scmp.lt.u32.totalorder %s490_s13, %s734_s3 }
 0x173   : > { %p492_p5 = pnand %p491_p4, %p794_p12 }
 0x174   : > { %p497_p8 = por %p496_p2, %p495_p0 }
 0x175   : > { %p493_p10 = pneg %p492_p5 }
 0x176   : > { %p499_p1 = por %p498_p3, %p497_p8 }
 0x178   : > { %p500_p9 = pnand %p499_p1, %p493_p10 }
 0x17a   : > { %503 = shalt.err (!%p500_p9)
}
 0x17b   : > { %371 = dma.vmem_to_hbm [thread:$0]  (%p794_p12), %s277_s5, 64, %s734_s3, %s262_s17  }
 0x17c PF: > { %p383_p11 = scmp.ge.s32.totalorder %s566_s12, 2  ;;  %s288_s24 = sand.u32 1, %s542_s6  }
 0x17d   : > { %p795_p6 = scmp.ne.s32.totalorder %s789_s27, 0  ;;  %s289_s28 = scalar_lea.sflag [#allocation5], %s288_s24 }
 0x17f   : > { %p378_p13 = pnand %p383_p11, %p795_p6 }
 0x181   : > { %537 = dma.done.wait (!%p378_p13), %s289_s28, 64  }
 0x182   : > { %539 = vsyncadd (!%p378_p13), %s289_s28, 4294967232  ;;  %p14_p12 = scmp.ge.s32.totalorder %s620_s15, 7   ;;  %s796_s6 = smov %s546_s7 }
 0x183   : > { %s797_s7 = smov %s550_s8  ;;  %s798_s8 = smov %s651_s25 }
 0x184   : > { %s799_s9 = smov %s558_s10  ;;  %s800_s10 = smov %s562_s11 }
 0x185   : > { %s801_s11 = smov %s639_s22  ;;  %s802_s12 = smov %s620_s15 }
 0x186   :  { %16 = sbr.rel (!%p14_p12) target bundleno = 7 (0x7), region = 83 }
 0x18d   :  { %294 = vsyncpa [#allocation4], 1 }
 0x18e   :  { %296 = vsyncpa [#allocation4 + $0x1], 1 }
 0x18f   :  { %297 = vsyncpa [#allocation5], 1 }
 0x190   :  { %299 = vsyncpa [#allocation5 + $0x1], 1 }

</bundles_post_ra>
